<compile_context>
chip_gen: v6e
topology: v6e:2x2x1
jax: 0.10.0
libtpu: 0.0.40
codegen_flags: <defaults>
</compile_context>

<pallas_src>
import functools
import math

import jax
import jax.numpy as jnp
from jax.experimental import pallas as pl
from jax.experimental.pallas import tpu as pltpu

F32 = jnp.float32

# bf16 MXU operands (f32 accumulation): the MXU is bf16-native on v5e/v6e/v7x;
# bf16 activations also halve HBM round-trip traffic between kernels.
# Set False to reproduce PyTorch f32 numerics bit-closely.
USE_BF16_MXU = True
ACT_DTYPE = jnp.bfloat16 if USE_BF16_MXU else jnp.float32

_TILE_M_MM = 256                     # row tile for matmul kernels
_TILE_M_LN = 512                     # bigger row tile for mem-bound LN kernels
_TILE_N = 512                        # output-column tile (2-D matmul grid)
_TILE_B = 8 if USE_BF16_MXU else 4   # MHA sequence-batch tile (VMEM-sized)
_CLS_PAD = 128                       # lane-dense classifier width (true = 1)
_VMEM_LIMIT = 64 * 1024 * 1024       # explicit scoped-VMEM headroom (v7x-safe)


def _cp(dim_sem):
    return pltpu.CompilerParams(dimension_semantics=dim_sem,
                                vmem_limit_bytes=_VMEM_LIMIT)


def _row_tile(m, cap):
    return m if m <= cap else cap


def _col_tile(n):
    if n <= _TILE_N:
        return n
    for t in (_TILE_N, 256, 128):
        if n % t == 0:
            return t
    return n


# ---------------- Pallas kernels (hot path) ----------------

def _matmul_bias_act_kernel(x_ref, w_ref, b_ref, o_ref, *, activation):
    # bf16 operands -> MXU, f32 accumulation.
    # TODO(synk): add a K grid axis + VMEM f32 accumulator for very large K.
    y = jnp.dot(x_ref[...], w_ref[...], preferred_element_type=F32)
    y = y + b_ref[...].astype(F32)
    if activation == "gelu":
        y = jax.nn.gelu(y, approximate=False)   # matches torch exact GELU
    elif activation == "tanh":
        y = jnp.tanh(y)
    o_ref[...] = y.astype(o_ref.dtype)


def matmul_bias(x, w, b, activation=None, out_dtype=None):
    """o = act(x @ w + b); x:[M,K] (bf16), w:[K,N] (bf16), b:[N] (f32).

    2-D (M-tile x N-tile) "parallel" grid: double-buffer pipelined, shards
    across both v7x TensorCores, and keeps each weight block small.
    """
    M, K = x.shape
    _, N = w.shape
    out_dtype = out_dtype or x.dtype
    tm = _row_tile(M, _TILE_M_MM)
    tn = _col_tile(N)
    # TODO(synk): single-buffer the index-invariant weight/bias blocks
    # (pipeline_mode=pl.Buffered(1)) once supported on the top-level
    # pallas_call pipeline; halves their VMEM footprint at BERT-base widths.
    return pl.pallas_call(
        functools.partial(_matmul_bias_act_kernel, activation=activation),
        out_shape=jax.ShapeDtypeStruct((M, N), out_dtype),
        grid=(pl.cdiv(M, tm), pl.cdiv(N, tn)),
        in_specs=[pl.BlockSpec((tm, K), lambda i, j: (i, 0)),
                  pl.BlockSpec((K, tn), lambda i, j: (0, j)),
                  pl.BlockSpec((1, tn), lambda i, j: (0, j))],
        out_specs=pl.BlockSpec((tm, tn), lambda i, j: (i, j)),
        compiler_params=_cp(("parallel", "parallel")),
    )(x, w, b.reshape(1, N))


def _matmul_residual_ln_kernel(x_ref, w_ref, b_ref, r_ref, g_ref, bb_ref,
                               o_ref, *, eps):
    y = jnp.dot(x_ref[...], w_ref[...], preferred_element_type=F32)
    y = y + b_ref[...].astype(F32) + r_ref[...].astype(F32)
    mean = jnp.mean(y, axis=-1, keepdims=True)                      # f32 stats
    var = jnp.mean(jnp.square(y - mean), axis=-1, keepdims=True)    # biased (torch LN)
    y = (y - mean) * jax.lax.rsqrt(var + eps)
    o_ref[...] = (y * g_ref[...].astype(F32)
                  + bb_ref[...].astype(F32)).astype(o_ref.dtype)


def matmul_residual_ln(x, w, b, residual, gamma, beta, eps=1e-12):
    """o = LayerNorm(x @ w + b + residual); full N per block (LN over rows)."""
    M, K = x.shape
    _, N = w.shape
    tm = _row_tile(M, _TILE_M_LN)    # mem-bound: bigger row tiles
    return pl.pallas_call(
        functools.partial(_matmul_residual_ln_kernel, eps=eps),
        out_shape=jax.ShapeDtypeStruct((M, N), x.dtype),
        grid=(pl.cdiv(M, tm),),
        in_specs=[pl.BlockSpec((tm, K), lambda i: (i, 0)),
                  pl.BlockSpec((K, N), lambda i: (0, 0)),
                  pl.BlockSpec((1, N), lambda i: (0, 0)),
                  pl.BlockSpec((tm, N), lambda i: (i, 0)),
                  pl.BlockSpec((1, N), lambda i: (0, 0)),
                  pl.BlockSpec((1, N), lambda i: (0, 0))],
        out_specs=pl.BlockSpec((tm, N), lambda i: (i, 0)),
        compiler_params=_cp(("parallel",)),
    )(x, w, b.reshape(1, N), residual, gamma.reshape(1, N), beta.reshape(1, N))


def _ln_kernel(x_ref, g_ref, b_ref, o_ref, *, eps):
    x = x_ref[...].astype(F32)
    mean = jnp.mean(x, axis=-1, keepdims=True)
    var = jnp.mean(jnp.square(x - mean), axis=-1, keepdims=True)
    y = (x - mean) * jax.lax.rsqrt(var + eps)
    o_ref[...] = (y * g_ref[...].astype(F32)
                  + b_ref[...].astype(F32)).astype(o_ref.dtype)


def layernorm(x, gamma, beta, eps=1e-12, out_dtype=None):
    """o = LayerNorm(x) over last dim (no residual, no zeros DMA)."""
    M, N = x.shape
    out_dtype = out_dtype or x.dtype
    tm = _row_tile(M, _TILE_M_LN)
    return pl.pallas_call(
        functools.partial(_ln_kernel, eps=eps),
        out_shape=jax.ShapeDtypeStruct((M, N), out_dtype),
        grid=(pl.cdiv(M, tm),),
        in_specs=[pl.BlockSpec((tm, N), lambda i: (i, 0)),
                  pl.BlockSpec((1, N), lambda i: (0, 0)),
                  pl.BlockSpec((1, N), lambda i: (0, 0))],
        out_specs=pl.BlockSpec((tm, N), lambda i: (i, 0)),
        compiler_params=_cp(("parallel",)),
    )(x, gamma.reshape(1, N), beta.reshape(1, N))


def _mha_kernel(qkv_ref, m_ref, o_ref, *, nh, dh, scale):
    """Fused multi-head attention on a head-separated QKV slab.

    qkv_ref: [tb, S, 3*nh, dh] (free XLA reshape outside; per-head q/k/v reads
    slice only non-lane dims -> no lane-misaligned relayout copies).
    m_ref: [tb, 1, S] additive padding mask (broadcast in-kernel).
    o_ref: [tb, S, H]; each head stored directly (no concat temporary).
    """
    # TODO(synk): flash-style online softmax over KV tiles (grid axis
    # "arbitrary" + VMEM m/l/acc scratch) for long sequences (S >= 1024).
    mask = m_ref[...].astype(F32)                         # [tb, 1, S]
    for h in range(nh):                                   # static head loop
        qh = qkv_ref[:, :, h, :] * scale                  # [tb, S, dh] bf16
        kh = qkv_ref[:, :, nh + h, :]
        vh = qkv_ref[:, :, 2 * nh + h, :]
        s = jnp.einsum("bqd,bkd->bqk", qh, kh, preferred_element_type=F32)
        s = s + mask                                      # softmax kept in f32
        s = s - jnp.max(s, axis=-1, keepdims=True)
        p = jnp.exp(s)
        p = p * pl.reciprocal(jnp.sum(p, axis=-1, keepdims=True), approx=True)
        ctx = jnp.einsum("bqk,bkd->bqd", p.astype(vh.dtype), vh,
                         preferred_element_type=F32)
        o_ref[:, :, h * dh:(h + 1) * dh] = ctx.astype(o_ref.dtype)


def mha(qkv4, mask_add, nh, dh, scale):
    """qkv4: [N, S, 3*nh, dh] head-separated; mask_add: [N,1,S] -> [N, S, H]."""
    N, S = qkv4.shape[0], qkv4.shape[1]
    H = nh * dh
    tb = N if N <= _TILE_B else _TILE_B
    return pl.pallas_call(
        functools.partial(_mha_kernel, nh=nh, dh=dh, scale=scale),
        out_shape=jax.ShapeDtypeStruct((N, S, H), ACT_DTYPE),
        grid=(pl.cdiv(N, tb),),
        in_specs=[pl.BlockSpec((tb, S, 3 * nh, dh), lambda i: (i, 0, 0, 0)),
                  pl.BlockSpec((tb, 1, S), lambda i: (i, 0, 0))],
        out_specs=pl.BlockSpec((tb, S, H), lambda i: (i, 0, 0)),
        compiler_params=_cp(("parallel",)),
    )(qkv4, mask_add)


def _pool_classify_kernel(x_ref, pw_ref, pb_ref, cw_ref, cb_ref, o_ref):
    pooled = jnp.tanh(jnp.dot(x_ref[...], pw_ref[...],
                              preferred_element_type=F32)
                      + pb_ref[...].astype(F32))                   # f32 tanh
    logits = jnp.dot(pooled.astype(cw_ref.dtype), cw_ref[...],
                     preferred_element_type=F32) + cb_ref[...].astype(F32)
    o_ref[...] = logits.astype(o_ref.dtype)


def pool_classify(x, pw, pb, cw_pad, cb_pad):
    """logits = tanh(x @ pw + pb) @ cw + cb; x:[M,H] -> [M,_CLS_PAD] (f32).

    cw is zero-padded to _CLS_PAD lanes so the output block is lane-dense
    (no vst.msk partial stores); the single real logit is sliced outside.
    """
    M, H = x.shape
    tm = _row_tile(M, _TILE_M_MM)
    return pl.pallas_call(
        _pool_classify_kernel,
        out_shape=jax.ShapeDtypeStruct((M, _CLS_PAD), F32),
        grid=(pl.cdiv(M, tm),),
        in_specs=[pl.BlockSpec((tm, H), lambda i: (i, 0)),
                  pl.BlockSpec((H, H), lambda i: (0, 0)),
                  pl.BlockSpec((1, H), lambda i: (0, 0)),
                  pl.BlockSpec((H, _CLS_PAD), lambda i: (0, 0)),
                  pl.BlockSpec((1, _CLS_PAD), lambda i: (0, 0))],
        out_specs=pl.BlockSpec((tm, _CLS_PAD), lambda i: (i, 0)),
        compiler_params=_cp(("parallel",)),
    )(x, pw, pb.reshape(1, H), cw_pad, cb_pad.reshape(1, _CLS_PAD))


# ---------------- Model definition (glue in plain JAX) ----------------

class Config:
    vocab_size = 30
    hidden_size = 32
    num_hidden_layers = 2
    num_attention_heads = 4
    intermediate_size = 64
    max_position_embeddings = 16
    type_vocab_size = 2
    num_labels = 4             # num_choice
    hidden_dropout_prob = 0.1  # eval mode -> identity
    layer_norm_eps = 1e-12


def init_params(cfg, key):
    H, I = cfg.hidden_size, cfg.intermediate_size
    keys = iter(jax.random.split(key, 256))

    def w(shape, scale=0.02):
        return (scale * jax.random.normal(next(keys), shape)).astype(F32)

    cls_w = w((H, 1))
    cls_w_pad = jnp.zeros((H, _CLS_PAD), F32).at[:, :1].set(cls_w)

    params = {
        "tok_emb": w((cfg.vocab_size, H)),
        "pos_emb": w((cfg.max_position_embeddings, H)),
        "typ_emb": w((cfg.type_vocab_size, H)),
        "emb_ln_g": jnp.ones((H,), F32), "emb_ln_b": jnp.zeros((H,), F32),
        "layers": [],
        "pool_w": w((H, H)).astype(ACT_DTYPE), "pool_b": jnp.zeros((H,), F32),
        "cls_w": cls_w_pad.astype(ACT_DTYPE),
        "cls_b": jnp.zeros((_CLS_PAD,), F32),
    }
    for _ in range(cfg.num_hidden_layers):
        wq, wk, wv = w((H, H)), w((H, H)), w((H, H))
        params["layers"].append({
            # fused QKV weight [H, 3H]: columns ordered q|k|v, each head-major,
            # so a free reshape to [..., 3*nh, dh] splits heads w/o relayout.
            "w_qkv": jnp.concatenate([wq, wk, wv], axis=1).astype(ACT_DTYPE),
            "b_qkv": jnp.zeros((3 * H,), F32),
            "wo": w((H, H)).astype(ACT_DTYPE), "bo": jnp.zeros((H,), F32),
            "ln1_g": jnp.ones((H,), F32), "ln1_b": jnp.zeros((H,), F32),
            "wi": w((H, I)).astype(ACT_DTYPE), "bi": jnp.zeros((I,), F32),
            "wo2": w((I, H)).astype(ACT_DTYPE), "bo2": jnp.zeros((H,), F32),
            "ln2_g": jnp.ones((H,), F32), "ln2_b": jnp.zeros((H,), F32),
        })
    return params


def _bert_encoder(params, cfg, ids2d, mask2d, typ2d, position_ids):
    """Batch-first BertModel encoder; returns sequence activations [N*S, H]."""
    N, S = ids2d.shape
    H = cfg.hidden_size
    nh = cfg.num_attention_heads
    dh = H // nh

    # Embedding lookup (gather) kept in plain JAX glue; sums in f32.
    x = (params["tok_emb"][ids2d]
         + params["pos_emb"][position_ids][None, :, :]
         + params["typ_emb"][typ2d])
    x2d = layernorm(x.reshape(N * S, H), params["emb_ln_g"],
                    params["emb_ln_b"], cfg.layer_norm_eps,
                    out_dtype=ACT_DTYPE)
    # embedding dropout: identity in eval mode

    # additive key-padding mask (0 valid, -1e9 pad); broadcast in-kernel
    mask_add = ((1.0 - mask2d.astype(F32)) * -1e9)[:, None, :]     # [N, 1, S]
    scale = 1.0 / math.sqrt(dh)

    for lp in params["layers"]:
        qkv = matmul_bias(x2d, lp["w_qkv"], lp["b_qkv"])           # [N*S, 3H]
        ctx = mha(qkv.reshape(N, S, 3 * nh, dh), mask_add, nh, dh, scale)
        # attention dropout: identity in eval mode
        x2d = matmul_residual_ln(ctx.reshape(N * S, H), lp["wo"], lp["bo"],
                                 x2d, lp["ln1_g"], lp["ln1_b"],
                                 cfg.layer_norm_eps)
        ffn = matmul_bias(x2d, lp["wi"], lp["bi"], activation="gelu")
        x2d = matmul_residual_ln(ffn, lp["wo2"], lp["bo2"],
                                 x2d, lp["ln2_g"], lp["ln2_b"],
                                 cfg.layer_norm_eps)
    return x2d


def bert_for_multiple_choice(params, cfg, input_ids, attention_mask,
                             token_type_ids, position_ids=None, labels=None):
    """input_ids / attention_mask / token_type_ids: [B, num_choice, S].

    (The torch module's .transpose(0,1) only adapts to its seq-first BertModel
    convention; this batch-first implementation is semantically equivalent.)
    """
    B, C, S = input_ids.shape
    flat_ids = input_ids.reshape(-1, S)
    flat_typ = token_type_ids.reshape(-1, S)
    flat_msk = attention_mask.reshape(-1, S)
    if position_ids is None:
        position_ids = jnp.arange(S, dtype=jnp.int32)

    x2d = _bert_encoder(params, cfg, flat_ids, flat_msk, flat_typ, position_ids)
    H = cfg.hidden_size
    first_tok = x2d.reshape(B * C, S, H)[:, 0, :]                   # [CLS]

    # pooler (tanh) + dropout (identity in eval) + classifier, fused
    logits_pad = pool_classify(first_tok, params["pool_w"], params["pool_b"],
                               params["cls_w"], params["cls_b"])    # [N, 128]
    logits = logits_pad[:, :1]                                      # real logit
    shaped_logits = logits.reshape(-1, C)   # num_choice from input shape
    if labels is not None:
        logp = jax.nn.log_softmax(shaped_logits, axis=-1)
        loss = -jnp.mean(jnp.take_along_axis(logp, labels.reshape(-1, 1),
                                             axis=-1))
        return loss, shaped_logits
    return shaped_logits


# ---------------- Demo ----------------

if __name__ == "__main__":
    cfg = Config()
    key = jax.random.PRNGKey(0)
    kp, kid, ktyp, klab = jax.random.split(key, 4)
    params = init_params(cfg, kp)

    B, C, S = 2, cfg.num_labels, 8
    input_ids = jax.random.randint(kid, (B, C, S), 0, cfg.vocab_size,
                                   dtype=jnp.int32)
    token_type_ids = jax.random.randint(ktyp, (B, C, S), 0, cfg.type_vocab_size,
                                        dtype=jnp.int32)
    # 1 = valid token, 0 = padding; pad the last two positions of every seq
    attention_mask = jnp.ones((B, C, S), jnp.int32).at[:, :, -2:].set(0)
    labels = jax.random.randint(klab, (B,), 0, C, dtype=jnp.int32)

    loss, shaped_logits = bert_for_multiple_choice(
        params, cfg, input_ids, attention_mask, token_type_ids, labels=labels)
    jax.block_until_ready((loss, shaped_logits))

    assert shaped_logits.shape == (B, C)
    assert bool(jnp.isfinite(loss)) and bool(jnp.all(jnp.isfinite(shaped_logits)))
    print("KERNEL_OK")
</pallas_src>

<mosaic_0001>
module attributes {stable_mosaic.version = 11 : i64} {
  func.func @_ln_kernel(%arg0: i32, %arg1: memref<64x32xf32, #tpu.memory_space<vmem>>, %arg2: memref<1x32xf32, #tpu.memory_space<vmem>>, %arg3: memref<1x32xf32, #tpu.memory_space<vmem>>, %arg4: memref<64x32xbf16, #tpu.memory_space<vmem>>) attributes {dimension_semantics = [#tpu.dimension_semantics<parallel>], iteration_bounds = array<i64: 1>, scalar_prefetch = 0 : i64, scratch_operands = 0 : i64, tpu.core_type = #tpu.core_type<tc>, window_params = [{transform_indices = @transform_0, window_bounds = array<i64: 64, 32>}, {pipeline_mode = #tpu.pipeline_mode<synchronous>, transform_indices = @transform_1, window_bounds = array<i64: 1, 32>}, {pipeline_mode = #tpu.pipeline_mode<synchronous>, transform_indices = @transform_2, window_bounds = array<i64: 1, 32>}, {transform_indices = @transform_3, window_bounds = array<i64: 64, 32>}]} {
    %c0 = arith.constant 0 : index
    %c0_0 = arith.constant 0 : index
    %0 = vector.load %arg1[%c0, %c0_0] : memref<64x32xf32, #tpu.memory_space<vmem>>, vector<64x32xf32>
    %cst = arith.constant dense<0.000000e+00> : vector<64xf32>
    %1 = vector.multi_reduction <add>, %0, %cst [1] : vector<64x32xf32> to vector<64xf32>
    %2 = vector.shape_cast %1 : vector<64xf32> to vector<64x1xf32>
    %cst_1 = arith.constant 3.200000e+01 : f32
    %3 = vector.broadcast %cst_1 : f32 to vector<64x1xf32>
    %4 = arith.divf %2, %3 : vector<64x1xf32>
    %5 = vector.broadcast %4 : vector<64x1xf32> to vector<64x32xf32>
    %6 = arith.subf %0, %5 : vector<64x32xf32>
    %7 = arith.mulf %6, %6 : vector<64x32xf32>
    %cst_2 = arith.constant dense<0.000000e+00> : vector<64xf32>
    %8 = vector.multi_reduction <add>, %7, %cst_2 [1] : vector<64x32xf32> to vector<64xf32>
    %9 = vector.shape_cast %8 : vector<64xf32> to vector<64x1xf32>
    %cst_3 = arith.constant 3.200000e+01 : f32
    %10 = vector.broadcast %cst_3 : f32 to vector<64x1xf32>
    %11 = arith.divf %9, %10 : vector<64x1xf32>
    %12 = vector.broadcast %4 : vector<64x1xf32> to vector<64x32xf32>
    %13 = arith.subf %0, %12 : vector<64x32xf32>
    %cst_4 = arith.constant 9.99999996E-13 : f32
    %14 = vector.broadcast %cst_4 : f32 to vector<64x1xf32>
    %15 = arith.addf %11, %14 : vector<64x1xf32>
    %16 = math.rsqrt %15 : vector<64x1xf32>
    %17 = vector.broadcast %16 : vector<64x1xf32> to vector<64x32xf32>
    %18 = arith.mulf %13, %17 : vector<64x32xf32>
    %c0_5 = arith.constant 0 : index
    %c0_6 = arith.constant 0 : index
    %19 = vector.load %arg2[%c0_5, %c0_6] : memref<1x32xf32, #tpu.memory_space<vmem>>, vector<1x32xf32>
    %20 = vector.broadcast %19 : vector<1x32xf32> to vector<64x32xf32>
    %21 = arith.mulf %18, %20 : vector<64x32xf32>
    %c0_7 = arith.constant 0 : index
    %c0_8 = arith.constant 0 : index
    %22 = vector.load %arg3[%c0_7, %c0_8] : memref<1x32xf32, #tpu.memory_space<vmem>>, vector<1x32xf32>
    %23 = vector.broadcast %22 : vector<1x32xf32> to vector<64x32xf32>
    %24 = arith.addf %21, %23 : vector<64x32xf32>
    %25 = arith.truncf %24 : vector<64x32xf32> to vector<64x32xbf16>
    %c0_9 = arith.constant 0 : index
    %c0_10 = arith.constant 0 : index
    %26 = vector.load %arg4[%c0_9, %c0_10] : memref<64x32xbf16, #tpu.memory_space<vmem>>, vector<64x32xbf16>
    tpu.vector_store %arg4[%c0_9, %c0_10], %25 {strides = array<i32>} : memref<64x32xbf16, #tpu.memory_space<vmem>>, vector<64x32xbf16>,
    return
  }
  func.func @transform_0(%arg0: i32) -> (i32, i32) {
    %c0_i32 = arith.constant 0 : i32
    %c0_i32_0 = arith.constant 0 : i32
    return %arg0, %c0_i32 : i32, i32
  }
  func.func @transform_1(%arg0: i32) -> (i32, i32) {
    %c0_i32 = arith.constant 0 : i32
    %c0_i32_0 = arith.constant 0 : i32
    %c0_i32_1 = arith.constant 0 : i32
    return %c0_i32, %c0_i32_0 : i32, i32
  }
  func.func @transform_2(%arg0: i32) -> (i32, i32) {
    %c0_i32 = arith.constant 0 : i32
    %c0_i32_0 = arith.constant 0 : i32
    %c0_i32_1 = arith.constant 0 : i32
    return %c0_i32, %c0_i32_0 : i32, i32
  }
  func.func @transform_3(%arg0: i32) -> (i32, i32) {
    %c0_i32 = arith.constant 0 : i32
    %c0_i32_0 = arith.constant 0 : i32
    return %arg0, %c0_i32 : i32, i32
  }
}

</mosaic_0001>

<bundles_post_ra>
// kernel: tpu_custom_call.1
= control target key start
LH: loop header
LB: loop body
LE: loop exit
PB: predicated region body
PF: predicated region fallthrough
CT: control target
= control target key end

     0   :  { %vm22_vm0 = vcmask 261120   ;;  %vm190_vm1 = vcmask 257024   ;;  %s375_s0 = inlined_call_operand.vmem [shape: f32[64,32], index: 0, kind: input, shape index: {}]   ;;  %s376_s1 = inlined_call_operand.vmem [shape: f32[1,32], index: 1, kind: input, shape index: {}]   ;;  %s377_s2 = inlined_call_operand.vmem [shape: f32[1,32], index: 2, kind: input, shape index: {}]   ;;  %s378_s3 = inlined_call_operand.vmem [shape: bf16[64,32], index: 3, kind: output, shape index: {}]  }
   0x1   :  { %v14_v0 = vld [vmem:[%s375_s0] sm:$0xff]  ;;  %v16_v1 = vld [vmem:[%s375_s0 + $0x10] sm:$0xff]  ;;  %v15_v2 = vld [vmem:[%s375_s0 + $0x8] sm:$0xff] }
   0x2   :  { %v23_v3 = vsel %vm22_vm0, %v14_v0, 0.0  ;;  %v29_v4 = vsel %vm22_vm0, %v16_v1, 0.0  ;;  %v17_v5 = vld [vmem:[%s375_s0 + $0x18] sm:$0xff]  ;;  %v26_v6 = vsel %vm22_vm0, %v15_v2, 0.0  ;;  %v18_v8 = vld [vmem:[%s375_s0 + $0x20] sm:$0xff]  ;;  %v19_v9 = vld [vmem:[%s375_s0 + $0x28] sm:$0xff] }
   0x3   :  { %24 = vadd.xlane.f32.xlu0 %v23_v3  ;;  %30 = vadd.xlane.f32.xlu1 %v29_v4  ;;  %v32_v7 = vsel %vm22_vm0, %v17_v5, 0.0  ;;  %v35_v10 = vsel %vm22_vm0, %v18_v8, 0.0  ;;  %v38_v11 = vsel %vm22_vm0, %v19_v9, 0.0  ;;  %v20_v12 = vld [vmem:[%s375_s0 + $0x30] sm:$0xff]  ;;  %v21_v13 = vld [vmem:[%s375_s0 + $0x38] sm:$0xff] }
   0x4   :  { %v41_v14 = vsel %vm22_vm0, %v20_v12, 0.0  ;;  %v44_v15 = vsel %vm22_vm0, %v21_v13, 0.0 }
   0x7   :  { %27 = vadd.xlane.f32.xlu0 %v26_v6  ;;  %33 = vadd.xlane.f32.xlu1 %v32_v7 }
   0xb   :  { %36 = vadd.xlane.f32.xlu0 %v35_v10  ;;  %39 = vadd.xlane.f32.xlu1 %v38_v11 }
   0xf   :  { %42 = vadd.xlane.f32.xlu0 %v41_v14  ;;  %45 = vadd.xlane.f32.xlu1 %v44_v15 }
  0x8c   :  { %v25_v16 = vpop.xlane.xlu0 %24  ;;  %v31_v17 = vpop.xlane.xlu1 %30 }
  0x8d   :  { %v48_v18 = vmul.f32 0.03125, %v25_v16  ;;  %v50_v19 = vmul.f32 0.03125, %v31_v17  ;;  %v203_v16 = vld [vmem:[%s376_s1] ss:$0 sm:$0xff] }
  0x8f   :  { %v289_v20 = vsub.f32 %v14_v0, %v48_v18  ;;  %v291_v21 = vsub.f32 %v16_v1, %v50_v19  ;;  %v204_v19 = vld [vmem:[%s377_s2] ss:$0 sm:$0xff] }
  0x90   :  { %v28_v22 = vpop.xlane.xlu0 %27  ;;  %v34_v23 = vpop.xlane.xlu1 %33 }
  0x91   :  { %v49_v24 = vmul.f32 0.03125, %v28_v22  ;;  %v51_v25 = vmul.f32 0.03125, %v34_v23  ;;  %v64_v26 = vmul.f32 %v289_v20, %v289_v20  ;;  %v66_v27 = vmul.f32 %v291_v21, %v291_v21 }
  0x93   :  { %v297_v28 = vsub.f32 %v15_v2, %v49_v24  ;;  %v299_v29 = vsub.f32 %v17_v5, %v51_v25  ;;  %v72_v30 = vsel %vm22_vm0, %v64_v26, 0.0  ;;  %v78_v33 = vsel %vm22_vm0, %v66_v27, 0.0 }
  0x94   :  { %73 = vadd.xlane.f32.xlu0 %v72_v30  ;;  %v37_v31 = vpop.xlane.xlu0 %36  ;;  %v40_v32 = vpop.xlane.xlu1 %39 }
  0x95   :  { %v52_v34 = vmul.f32 0.03125, %v37_v31  ;;  %v53_v35 = vmul.f32 0.03125, %v40_v32  ;;  %v65_v36 = vmul.f32 %v297_v28, %v297_v28  ;;  %v67_v37 = vmul.f32 %v299_v29, %v299_v29 }
  0x97   :  { %v307_v38 = vsub.f32 %v18_v8, %v52_v34  ;;  %v309_v39 = vsub.f32 %v19_v9, %v53_v35  ;;  %v75_v40 = vsel %vm22_vm0, %v65_v36, 0.0  ;;  %v81_v43 = vsel %vm22_vm0, %v67_v37, 0.0 }
  0x98   :  { %79 = vadd.xlane.f32.xlu0 %v78_v33  ;;  %76 = vadd.xlane.f32.xlu1 %v75_v40  ;;  %v43_v41 = vpop.xlane.xlu0 %42  ;;  %v46_v42 = vpop.xlane.xlu1 %45 }
  0x99   :  { %v54_v44 = vmul.f32 0.03125, %v43_v41  ;;  %v55_v45 = vmul.f32 0.03125, %v46_v42  ;;  %v68_v46 = vmul.f32 %v307_v38, %v307_v38  ;;  %v69_v47 = vmul.f32 %v309_v39, %v309_v39 }
  0x9b   :  { %v317_v48 = vsub.f32 %v20_v12, %v54_v44  ;;  %v319_v49 = vsub.f32 %v21_v13, %v55_v45  ;;  %v84_v50 = vsel %vm22_vm0, %v68_v46, 0.0  ;;  %v87_v51 = vsel %vm22_vm0, %v69_v47, 0.0 }
  0x9c   :  { %82 = vadd.xlane.f32.xlu1 %v81_v43  ;;  %85 = vadd.xlane.f32.xlu0 %v84_v50 }
  0x9d   :  { %v70_v52 = vmul.f32 %v317_v48, %v317_v48  ;;  %v71_v53 = vmul.f32 %v319_v49, %v319_v49 }
  0x9f   :  { %v90_v54 = vsel %vm22_vm0, %v70_v52, 0.0  ;;  %v93_v55 = vsel %vm22_vm0, %v71_v53, 0.0 }
  0xa0   :  { %88 = vadd.xlane.f32.xlu1 %v87_v51  ;;  %91 = vadd.xlane.f32.xlu0 %v90_v54 }
  0xa4   :  { %94 = vadd.xlane.f32.xlu1 %v93_v55 }
 0x11d   :  { %v74_v56 = vpop.xlane.xlu0 %73 }
 0x11e   :  { %v96_v57 = vmul.f32 0.03125, %v74_v56 }
 0x120   :  { %v104_v58 = vadd.f32 1e-12, %v96_v57 }
 0x121   :  { %v77_v59 = vpop.xlane.xlu1 %76  ;;  %v80_v60 = vpop.xlane.xlu0 %79 }
 0x122   :  { %221 = vrsqrt.f32 %v104_v58  ;;  %v97_v61 = vmul.f32 0.03125, %v77_v59  ;;  %v98_v62 = vmul.f32 0.03125, %v80_v60 }
 0x124   :  { %v105_v63 = vadd.f32 1e-12, %v97_v61  ;;  %v106_v0 = vadd.f32 1e-12, %v98_v62 }
 0x125   :  { %v83_v1 = vpop.xlane.xlu1 %82  ;;  %v86_v2 = vpop.xlane.xlu0 %85 }
 0x126   :  { %223 = vrsqrt.f32 %v105_v63  ;;  %v99_v3 = vmul.f32 0.03125, %v83_v1  ;;  %v100_v4 = vmul.f32 0.03125, %v86_v2 }
 0x127   :  { %225 = vrsqrt.f32 %v106_v0 }
 0x128   :  { %v107_v5 = vadd.f32 1e-12, %v99_v3  ;;  %v108_v6 = vadd.f32 1e-12, %v100_v4 }
 0x129   :  { %v89_v7 = vpop.xlane.xlu1 %88  ;;  %v92_v8 = vpop.xlane.xlu0 %91 }
 0x12a   :  { %227 = vrsqrt.f32 %v107_v5  ;;  %v101_v9 = vmul.f32 0.03125, %v89_v7  ;;  %v102_v10 = vmul.f32 0.03125, %v92_v8 }
 0x12b   :  { %229 = vrsqrt.f32 %v108_v6 }
 0x12c   :  { %v109_v11 = vadd.f32 1e-12, %v101_v9  ;;  %v110_v12 = vadd.f32 1e-12, %v102_v10 }
 0x12d   :  { %v95_v13 = vpop.xlane.xlu1 %94 }
 0x12e   :  { %231 = vrsqrt.f32 %v109_v11  ;;  %v103_v14 = vmul.f32 0.03125, %v95_v13 }
 0x12f   :  { %v222_v15 = vpop.eup %221  ;;  %233 = vrsqrt.f32 %v110_v12 }
 0x130   :  { %v120_v17 = vmul.f32 %v222_v15, %v289_v20  ;;  %v111_v18 = vadd.f32 1e-12, %v103_v14 }
 0x132   :  { %v135_v22 = vmul.f32 %v203_v16, %v120_v17  ;;  %235 = vrsqrt.f32 %v111_v18 }
 0x133   :  { %v224_v23 = vpop.eup %223 }
 0x134   :  { %v226_v24 = vpop.eup %225  ;;  %v150_v25 = vadd.f32 %v204_v19, %v135_v22  ;;  %v121_v26 = vmul.f32 %v224_v23, %v297_v28 }
 0x135   :  { %v122_v27 = vmul.f32 %v226_v24, %v291_v21 }
 0x136   :  { %v213_v30 = vpack.c.bf16 %v150_v25, %v150_v25  ;;  %v136_v31 = vmul.f32 %v203_v16, %v121_v26 }
 0x137   :  { %v228_v32 = vpop.eup %227  ;;  %v137_v33 = vmul.f32 %v203_v16, %v122_v27 }
 0x138   :  { %v230_v20 = vpop.eup %229  ;;  %191 = vst.msk [vmem:[%s378_s3] sm:$0xf] %vm190_vm1, %v213_v30  ;;  %v151_v34 = vadd.f32 %v204_v19, %v136_v31  ;;  %v123_v35 = vmul.f32 %v228_v32, %v299_v29 }
 0x139   :  { %v152_v36 = vadd.f32 %v204_v19, %v137_v33  ;;  %v124_v37 = vmul.f32 %v230_v20, %v307_v38 }
 0x13a   :  { %v214_v28 = vpack.c.bf16 %v151_v34, %v151_v34  ;;  %v138_v40 = vmul.f32 %v203_v16, %v123_v35 }
 0x13b   :  { %v232_v41 = vpop.eup %231  ;;  %v215_v21 = vpack.c.bf16 %v152_v36, %v152_v36  ;;  %v139_v42 = vmul.f32 %v203_v16, %v124_v37 }
 0x13c   :  { %v234_v43 = vpop.eup %233  ;;  %192 = vst.msk [vmem:[%s378_s3 + $0x4] sm:$0xf] %vm190_vm1, %v214_v28  ;;  %v153_v44 = vadd.f32 %v204_v19, %v138_v40  ;;  %v125_v45 = vmul.f32 %v232_v41, %v309_v39 }
 0x13d   :  { %193 = vst.msk [vmem:[%s378_s3 + $0x8] sm:$0xf] %vm190_vm1, %v215_v21  ;;  %v154_v29 = vadd.f32 %v204_v19, %v139_v42  ;;  %v126_v38 = vmul.f32 %v234_v43, %v317_v48 }
 0x13e   :  { %v216_v46 = vpack.c.bf16 %v153_v44, %v153_v44  ;;  %v140_v47 = vmul.f32 %v203_v16, %v125_v45 }
 0x13f   :  { %v236_v50 = vpop.eup %235  ;;  %v217_v51 = vpack.c.bf16 %v154_v29, %v154_v29  ;;  %v141_v52 = vmul.f32 %v203_v16, %v126_v38 }
 0x140   :  { %194 = vst.msk [vmem:[%s378_s3 + $0xc] sm:$0xf] %vm190_vm1, %v216_v46  ;;  %v155_v53 = vadd.f32 %v204_v19, %v140_v47  ;;  %v127_v39 = vmul.f32 %v236_v50, %v319_v49 }
 0x141   :  { %195 = vst.msk [vmem:[%s378_s3 + $0x10] sm:$0xf] %vm190_vm1, %v217_v51  ;;  %v156_v54 = vadd.f32 %v204_v19, %v141_v52 }
 0x142   :  { %v218_v48 = vpack.c.bf16 %v155_v53, %v155_v53  ;;  %v142_v55 = vmul.f32 %v203_v16, %v127_v39 }
 0x143   :  { %v219_v56 = vpack.c.bf16 %v156_v54, %v156_v54 }
 0x144   :  { %196 = vst.msk [vmem:[%s378_s3 + $0x14] sm:$0xf] %vm190_vm1, %v218_v48  ;;  %v157_v57 = vadd.f32 %v204_v19, %v142_v55 }
 0x145   :  { %197 = vst.msk [vmem:[%s378_s3 + $0x18] sm:$0xf] %vm190_vm1, %v219_v56 }
 0x146   :  { %v220_v49 = vpack.c.bf16 %v157_v57, %v157_v57 }
 0x148   :  { %198 = vst.msk [vmem:[%s378_s3 + $0x1c] sm:$0xf] %vm190_vm1, %v220_v49 }

</bundles_post_ra>
